<compile_context>
chip_gen: v7x
topology: tpu7x:2x2x1
jax: 0.10.0
libtpu: 0.0.40
codegen_flags: <defaults>
</compile_context>

<pallas_src>
import functools

import jax
import jax.numpy as jnp
from jax.experimental import pallas as pl
from jax.experimental.pallas import tpu as pltpu


def _round_up(x, m):
    return ((x + m - 1) // m) * m


def _ce_label_smooth_kernel(logits_ref, targets_ref, loss_ref, *,
                            epsilon, num_classes, batch_size, tile_b,
                            tiles_per_split):
    """One (tile_b, K) batch tile -> accumulate a partial smoothed-CE sum in SMEM."""
    s = pl.program_id(0)          # "parallel" split index (second TensorCore on v7x)
    i = pl.program_id(1)          # "arbitrary" batch-tile index within the split

    @pl.when(i == 0)
    def _():
        loss_ref[0, 0] = jnp.float32(0.0)

    x = logits_ref[...].astype(jnp.float32)                 # (TB, K) f32 in-register
    tb, k = x.shape

    # Numerically stable logsumexp along the class (lane) axis.
    m = jnp.max(x, axis=1, keepdims=True)                            # (TB, 1)
    lse = m + jnp.log(jnp.sum(jnp.exp(x - m), axis=1, keepdims=True))

    # Fused smoothed CE (no one-hot / log_probs materialization):
    #   row_loss = logsumexp(x) - sum_k coef_k * x_k
    #   coef_k   = eps/K + (1 - eps) * [k == target]
    class_ids = jax.lax.broadcasted_iota(jnp.int32, (tb, k), 1)
    tgt = targets_ref[...]                                           # (TB, 1) int32
    coef_miss = jnp.float32(epsilon / num_classes)
    coef_hit = jnp.float32(epsilon / num_classes + (1.0 - epsilon))
    weighted = jnp.sum(x * jnp.where(class_ids == tgt, coef_hit, coef_miss),
                       axis=1, keepdims=True)                        # (TB, 1)
    row_loss = lse - weighted                                        # (TB, 1)

    # Mask rows past the true batch: the ragged last tile's extra rows are
    # unspecified (no wrapper-side batch padding any more).
    row0 = (s * tiles_per_split + i) * tile_b
    row_ids = row0 + jax.lax.broadcasted_iota(jnp.int32, (tb, 1), 0)
    partial = jnp.sum(jnp.where(row_ids < batch_size, row_loss, 0.0))

    loss_ref[0, 0] += partial

    @pl.when(i == pl.num_programs(1) - 1)
    def _():
        # mean over the *global* batch, matching (-t * log_probs).mean(0).sum().
        loss_ref[0, 0] = loss_ref[0, 0] * (1.0 / float(batch_size))


def cross_entropy_label_smooth(logits, targets, *, epsilon=0.1, tile_b=None):
    """logits: (B, K) float; targets: (B,) int class indices. Returns scalar f32."""
    b, k = logits.shape
    in_bytes = jnp.dtype(logits.dtype).itemsize
    sub = max(8, 32 // in_bytes)          # sublane packing: 8 f32 / 16 bf16 / 32 int8
    k_vmem = _round_up(k, 128)            # physical lane padding of one VMEM tile

    # v7x-safe VMEM budget (64 MiB/TC): double-buffered input tile in its native
    # dtype + ~5 live f32 (TB, K) intermediates + the lane-padded (TB, 1) target
    # column, kept under ~40 MiB so double-buffering never de-pipelines.
    bytes_per_row = 2 * k_vmem * in_bytes + 5 * k_vmem * 4 + 2 * 128 * 4
    budget = 40 * 1024 * 1024
    if tile_b is None:
        tb = max(sub, min(4096, (budget // bytes_per_row) // sub * sub))
    else:
        tb = max(sub, _round_up(int(tile_b), sub))
    tb = min(tb, _round_up(b, sub))

    num_tiles = pl.cdiv(b, tb)
    # 2-way "parallel" split feeds both TensorCores on v7x; only taken when it
    # divides evenly so single-TC parts (v5e/v6e) never pay a wasted padded tile.
    n_split = 2 if (num_tiles >= 2 and num_tiles % 2 == 0) else 1
    tiles_per_split = num_tiles // n_split

    targets_col = targets.astype(jnp.int32).reshape(b, 1)

    kernel = functools.partial(
        _ce_label_smooth_kernel,
        epsilon=float(epsilon), num_classes=int(k), batch_size=int(b),
        tile_b=int(tb), tiles_per_split=int(tiles_per_split))

    vmem_limit = int(min(48 * 1024 * 1024,
                         max(16 * 1024 * 1024, tb * bytes_per_row + (8 << 20))))

    partials = pl.pallas_call(
        kernel,
        out_shape=jax.ShapeDtypeStruct((n_split, 1), jnp.float32),
        grid=(n_split, tiles_per_split),
        in_specs=[
            # Full-extent class axis (legal even when K % 128 != 0): no jnp.pad,
            # logits are DMA'd untouched in their input dtype.
            pl.BlockSpec((tb, k), lambda s, i: (s * tiles_per_split + i, 0)),
            pl.BlockSpec((tb, 1), lambda s, i: (s * tiles_per_split + i, 0)),
        ],
        out_specs=pl.BlockSpec((1, 1), lambda s, i: (s, 0),
                               memory_space=pltpu.MemorySpace.SMEM),
        compiler_params=pltpu.CompilerParams(
            dimension_semantics=("parallel", "arbitrary"),
            vmem_limit_bytes=vmem_limit),
    )(logits, targets_col)

    return jnp.sum(partials)


def _reference(logits, targets, epsilon=0.1):
    k = logits.shape[1]
    log_probs = jax.nn.log_softmax(logits.astype(jnp.float32), axis=1)
    t = jax.nn.one_hot(targets, k, dtype=jnp.float32)
    t = (1.0 - epsilon) * t + epsilon / k
    return jnp.sum(jnp.mean(-t * log_probs, axis=0))


if __name__ == "__main__":
    key = jax.random.PRNGKey(0)
    k1, k2, k3, k4, k5, k6, k7, k8 = jax.random.split(key, 8)

    # Case 1: tiny "aligned" demo (B=8, K=32) -> single tile, single split.
    b1, c1 = 8, 32
    logits1 = jax.random.normal(k1, (b1, c1), dtype=jnp.float32)
    targets1 = jax.random.randint(k2, (b1,), 0, c1, dtype=jnp.int32)
    loss1 = cross_entropy_label_smooth(logits1, targets1, epsilon=0.1)
    jax.block_until_ready(loss1)
    ref1 = _reference(logits1, targets1, epsilon=0.1)
    assert jnp.allclose(loss1, ref1, rtol=1e-5, atol=1e-5), (loss1, ref1)

    # Case 2: unaligned K and ragged batch (B=20, K=200, tile_b=8 -> 3 tiles, the
    # last one partially out of bounds) -> exercises the no-padding row masking.
    b2, c2 = 20, 200
    logits2 = jax.random.normal(k3, (b2, c2), dtype=jnp.float32)
    targets2 = jax.random.randint(k4, (b2,), 0, c2, dtype=jnp.int32)
    loss2 = cross_entropy_label_smooth(logits2, targets2, epsilon=0.1, tile_b=8)
    jax.block_until_ready(loss2)
    ref2 = _reference(logits2, targets2, epsilon=0.1)
    assert jnp.allclose(loss2, ref2, rtol=1e-5, atol=1e-5), (loss2, ref2)

    # Case 3: even tile count (B=32, tile_b=8 -> 4 tiles) -> 2-way parallel split.
    b3, c3 = 32, 200
    logits3 = jax.random.normal(k5, (b3, c3), dtype=jnp.float32)
    targets3 = jax.random.randint(k6, (b3,), 0, c3, dtype=jnp.int32)
    loss3 = cross_entropy_label_smooth(logits3, targets3, epsilon=0.1, tile_b=8)
    jax.block_until_ready(loss3)
    ref3 = _reference(logits3, targets3, epsilon=0.1)
    assert jnp.allclose(loss3, ref3, rtol=1e-5, atol=1e-5), (loss3, ref3)

    # Case 4: bf16 logits (sublane packing of 16) DMA'd uncast, upcast in-register.
    b4, c4 = 48, 96
    logits4 = jax.random.normal(k7, (b4, c4), dtype=jnp.float32).astype(jnp.bfloat16)
    targets4 = jax.random.randint(k8, (b4,), 0, c4, dtype=jnp.int32)
    loss4 = cross_entropy_label_smooth(logits4, targets4, epsilon=0.1, tile_b=16)
    jax.block_until_ready(loss4)
    ref4 = _reference(logits4, targets4, epsilon=0.1)
    assert jnp.allclose(loss4, ref4, rtol=1e-4, atol=1e-4), (loss4, ref4)

    print("KERNEL_OK")
</pallas_src>

<mosaic_0001>
module attributes {stable_mosaic.version = 11 : i64} {
  func.func @_ce_label_smooth_kernel(%arg0: i32, %arg1: i32, %arg2: memref<8x32xf32, #tpu.memory_space<vmem>>, %arg3: memref<8x1xi32, #tpu.memory_space<vmem>>, %arg4: memref<1x1xf32, #tpu.memory_space<smem>>) attributes {dimension_semantics = [#tpu.dimension_semantics<parallel>, #tpu.dimension_semantics<arbitrary>], iteration_bounds = array<i64: 1, 1>, scalar_prefetch = 0 : i64, scratch_operands = 0 : i64, tpu.core_type = #tpu.core_type<tc>, window_params = [{transform_indices = @transform_0, window_bounds = array<i64: 8, 32>}, {transform_indices = @transform_1, window_bounds = array<i64: 8, 1>}, {transform_indices = @transform_2, window_bounds = array<i64: 1, 1>}]} {
    %c0_i32 = arith.constant 0 : i32
    %0 = arith.cmpi eq, %arg1, %c0_i32 : i32
    %1 = arith.extui %0 : i1 to i32
    %c0_i32_0 = arith.constant 0 : i32
    %2 = arith.cmpi ne, %1, %c0_i32_0 : i32
    scf.if %2 {
      %cst_17 = arith.constant 0.000000e+00 : f32
      %c0_18 = arith.constant 0 : index
      %c0_19 = arith.constant 0 : index
      %44 = memref.load %arg4[%c0_18, %c0_19] : memref<1x1xf32, #tpu.memory_space<smem>>
      memref.store %cst_17, %arg4[%c0_18, %c0_19] : memref<1x1xf32, #tpu.memory_space<smem>>
    } else {
    }
    %c0 = arith.constant 0 : index
    %c0_1 = arith.constant 0 : index
    %3 = vector.load %arg2[%c0, %c0_1] : memref<8x32xf32, #tpu.memory_space<vmem>>, vector<8x32xf32>
    %cst = arith.constant dense<0xFF800000> : vector<8xf32>
    %4 = vector.multi_reduction <maximumf>, %3, %cst [1] : vector<8x32xf32> to vector<8xf32>
    %5 = vector.shape_cast %4 : vector<8xf32> to vector<8x1xf32>
    %6 = vector.broadcast %5 : vector<8x1xf32> to vector<8x32xf32>
    %7 = arith.subf %3, %6 : vector<8x32xf32>
    %8 = math.exp %7 : vector<8x32xf32>
    %cst_2 = arith.constant dense<0.000000e+00> : vector<8xf32>
    %9 = vector.multi_reduction <add>, %8, %cst_2 [1] : vector<8x32xf32> to vector<8xf32>
    %10 = vector.shape_cast %9 : vector<8xf32> to vector<8x1xf32>
    %11 = math.log %10 : vector<8x1xf32>
    %12 = arith.addf %5, %11 : vector<8x1xf32>
    %13 = tpu.iota {dimensions = array<i32: 1>} : vector<8x32xi32>
    %c0_3 = arith.constant 0 : index
    %c0_4 = arith.constant 0 : index
    %14 = vector.load %arg3[%c0_3, %c0_4] : memref<8x1xi32, #tpu.memory_space<vmem>>, vector<8x1xi32>
    %15 = vector.broadcast %14 : vector<8x1xi32> to vector<8x32xi32>
    %16 = arith.cmpi eq, %13, %15 : vector<8x32xi32>
    %cst_5 = arith.constant 0.903124988 : f32
    %cst_6 = arith.constant 3.125000e-03 : f32
    %17 = vector.broadcast %cst_5 : f32 to vector<8x32xf32>
    %18 = vector.broadcast %cst_6 : f32 to vector<8x32xf32>
    %19 = arith.select %16, %17, %18 : vector<8x32xi1>, vector<8x32xf32>
    %20 = arith.mulf %3, %19 : vector<8x32xf32>
    %cst_7 = arith.constant dense<0.000000e+00> : vector<8xf32>
    %21 = vector.multi_reduction <add>, %20, %cst_7 [1] : vector<8x32xf32> to vector<8xf32>
    %22 = vector.shape_cast %21 : vector<8xf32> to vector<8x1xf32>
    %23 = arith.subf %12, %22 : vector<8x1xf32>
    %c1_i32 = arith.constant 1 : i32
    %24 = arith.muli %arg0, %c1_i32 : i32
    %25 = arith.addi %24, %arg1 : i32
    %c8_i32 = arith.constant 8 : i32
    %26 = arith.muli %25, %c8_i32 : i32
    %27 = tpu.iota {dimensions = array<i32: 0>} : vector<8x1xi32>
    %28 = vector.broadcast %26 : i32 to vector<8x1xi32>
    %29 = arith.addi %28, %27 : vector<8x1xi32>
    %c8_i32_8 = arith.constant 8 : i32
    %30 = vector.broadcast %c8_i32_8 : i32 to vector<8x1xi32>
    %31 = arith.cmpi slt, %29, %30 : vector<8x1xi32>
    %cst_9 = arith.constant 0.000000e+00 : f32
    %32 = vector.broadcast %cst_9 : f32 to vector<8x1xf32>
    %33 = arith.select %31, %23, %32 : vector<8x1xi1>, vector<8x1xf32>
    %34 = vector.shape_cast %33 : vector<8x1xf32> to vector<1x8x1xf32>
    %cst_10 = arith.constant dense<0.000000e+00> : vector<1xf32>
    %35 = vector.multi_reduction <add>, %34, %cst_10 [1, 2] : vector<1x8x1xf32> to vector<1xf32>
    %36 = vector.shape_cast %35 : vector<1xf32> to vector<1x1x1xf32>
    %37 = vector.extract %36[0, 0, 0] : f32 from vector<1x1x1xf32>
    %c0_11 = arith.constant 0 : index
    %c0_12 = arith.constant 0 : index
    %38 = memref.load %arg4[%c0_11, %c0_12] : memref<1x1xf32, #tpu.memory_space<smem>>
    %39 = arith.addf %38, %37 : f32
    %c0_13 = arith.constant 0 : index
    %c0_14 = arith.constant 0 : index
    %40 = memref.load %arg4[%c0_13, %c0_14] : memref<1x1xf32, #tpu.memory_space<smem>>
    memref.store %39, %arg4[%c0_13, %c0_14] : memref<1x1xf32, #tpu.memory_space<smem>>
    %c0_i32_15 = arith.constant 0 : i32
    %41 = arith.cmpi eq, %arg1, %c0_i32_15 : i32
    %42 = arith.extui %41 : i1 to i32
    %c0_i32_16 = arith.constant 0 : i32
    %43 = arith.cmpi ne, %42, %c0_i32_16 : i32
    scf.if %43 {
      %c0_17 = arith.constant 0 : index
      %c0_18 = arith.constant 0 : index
      %44 = memref.load %arg4[%c0_17, %c0_18] : memref<1x1xf32, #tpu.memory_space<smem>>
      %cst_19 = arith.constant 1.250000e-01 : f32
      %45 = arith.mulf %44, %cst_19 : f32
      %c0_20 = arith.constant 0 : index
      %c0_21 = arith.constant 0 : index
      %46 = memref.load %arg4[%c0_20, %c0_21] : memref<1x1xf32, #tpu.memory_space<smem>>
      memref.store %45, %arg4[%c0_20, %c0_21] : memref<1x1xf32, #tpu.memory_space<smem>>
    } else {
    }
    return
  }
  func.func @transform_0(%arg0: i32, %arg1: i32) -> (i32, i32) {
    %c1_i32 = arith.constant 1 : i32
    %0 = arith.muli %arg0, %c1_i32 : i32
    %1 = arith.addi %0, %arg1 : i32
    %c0_i32 = arith.constant 0 : i32
    %c0_i32_0 = arith.constant 0 : i32
    return %1, %c0_i32 : i32, i32
  }
  func.func @transform_1(%arg0: i32, %arg1: i32) -> (i32, i32) {
    %c1_i32 = arith.constant 1 : i32
    %0 = arith.muli %arg0, %c1_i32 : i32
    %1 = arith.addi %0, %arg1 : i32
    %c0_i32 = arith.constant 0 : i32
    %c0_i32_0 = arith.constant 0 : i32
    return %1, %c0_i32 : i32, i32
  }
  func.func @transform_2(%arg0: i32, %arg1: i32) -> (i32, i32) {
    %c0_i32 = arith.constant 0 : i32
    %c0_i32_0 = arith.constant 0 : i32
    return %arg0, %c0_i32 : i32, i32
  }
}

</mosaic_0001>

<bundles_post_ra>
// kernel: tpu_custom_call.1
= control target key start
LH: loop header
LB: loop body
LE: loop exit
PB: predicated region body
PF: predicated region fallthrough
CT: control target
= control target key end

     0   :  { %vm53_vm0 = vcmask 261120   ;;  %s195_s0 = inlined_call_operand.vmem [shape: f32[8,32], index: 0, kind: input, shape index: {}]   ;;  %s196_s1 = inlined_call_operand.vmem [shape: s32[8,1], index: 1, kind: input, shape index: {}]   ;;  %s197_s2 = inlined_call_operand.hbm [shape: f32[1,1], index: 2, kind: output, shape index: {}]  }
   0x1   :  { %v52_v0 = vld [vmem:[%s195_s0] sm:$0xff] }
   0x2   :  { %7 = vsyncpa [#allocation3], 0  ;;  %v54_v1 = vsel %vm53_vm0, %v52_v0, -inf  ;;  %v156_v2 = vmov 0   ;;  %v68_v3 = vld [vmem:[%s196_s1] sm:$0xff]  ;;  %v66_v6 = vlaneseq  ;;  %vm87_vm2 = vcmask 7168  }
   0x3   :  { %139 = vset.pattern.permute.xlu0 %v156_v2  ;;  %v157_v10 = vmov 0.003125   ;;  %s144_s15 = scalar_lea.hbm %s197_s2, 16 }
   0x4   :  { %55 = vmax.xlane.f32.xlu0 %v54_v1  ;;  %v67_v8 = vand.u32 127, %v66_v6  ;;  %p145_p0 = scmp.ne.s32.totalorder %s197_s2, %s144_s15  ;;  %p148_p1 = scmp.lt.u32.totalorder %s144_s15, %s197_s2 }
   0x6   :  { %p150_p2 = pnand %p148_p1, %p145_p0 }
  0x1a   :  { %70 = vperm.xlu0 %139, %v68_v3  }
  0x91   :  { %v56_v4 = vpop.xlane.xlu0 %55 }
  0x92   :  { %v57_v5 = vsub.f32 %v52_v0, %v56_v4 }
  0x94   :  { %v58_v7 = vmul.f32 1.442695, %v57_v5 }
  0x96   :  { %140 = vpow2.f32 %v58_v7 }
  0x99   :  { %v71_v9 = vpop.permute.xlu0 %70 }
  0x9a   :  { %vm72_vm1 = vcmp.eq.s32.totalorder %v67_v8, %v71_v9 }
  0x9b   :  { %v73_v11 = vsel %vm72_vm1, 0.903125, %v157_v10 }
  0x9c   :  { %v74_v12 = vmul.f32 %v73_v11, %v52_v0 }
  0x9e   :  { %v75_v15 = vsel %vm53_vm0, %v74_v12, 0.0 }
  0xa0   :  { %v141_v13 = vpop.eup %140 }
  0xa1   :  { %v60_v14 = vsel %vm53_vm0, %v141_v13, 0.0 }
  0xa2   :  { %61 = vadd.xlane.f32.xlu1 %v60_v14 }
  0xa6   :  { %76 = vadd.xlane.f32.xlu1 %v75_v15 }
 0x12f   :  { %v62_v16 = vpop.xlane.xlu1 %61 }
 0x130   :  { %142 = vlog2.f32 %v62_v16 }
 0x133   :  { %v77_v19 = vpop.xlane.xlu1 %76 }
 0x13a   :  { %v143_v17 = vpop.eup %142 }
 0x13b   :  { %v64_v18 = vmul.f32 0.6931472, %v143_v17 }
 0x13d   :  { %v65_v20 = vadd.f32 %v64_v18, %v56_v4 }
 0x13f   :  { %v78_v21 = vsub.f32 %v65_v20, %v77_v19 }
 0x141   :  { %v88_v22 = vsel %vm87_vm2, %v78_v21, 0.0 }
 0x142   :  { %89 = vadd.xlane.f32.xlu1 %v88_v22 }
 0x1cf   :  { %v90_v23 = vpop.xlane.xlu1 %89 }
 0x1d0   :  { %v91_v24 = vrot.slane %v90_v23, 4 }
 0x1d2   :  { %v92_v25 = vadd.f32 %v91_v24, %v90_v23 }
 0x1d4   :  { %v93_v26 = vrot.slane %v92_v25, 2 }
 0x1d6   :  { %v94_v27 = vadd.f32 %v93_v26, %v92_v25 }
 0x1d8   :  { %v95_v28 = vrot.slane %v94_v27, 1 }
 0x1da   :  { %v96_v29 = vadd.f32 %v95_v28, %v94_v27 }
 0x1dc   :  { %133 = vpush %v96_v29 }
 0x20d   :  { %s134_s0 = spop %133 }
 0x20e   :  { %s106_s1 = smul.f32 0.125, %s134_s0 }
 0x210   :  { %107 = sst [smem:[#allocation2]] %s106_s1 }
 0x211   :  { %153 = shalt.err (!%p150_p2)
}
 0x212   :  { %s158_s20 = smov [#allocation2]  }
 0x213   :  { %115 = dma.smem_to_hbm %s158_s20, 16, %s197_s2, [#allocation3]  }
 0x214   :  { %154 = dma.done.wait [#allocation3], 16  }
 0x215   :  { %155 = vsyncadd [#allocation3], 4294967280 }
 0x216   :  { %119 = sfence }
 0x217   :  { %120 = vsyncpa [#allocation3], 1 }

</bundles_post_ra>
